<compile_context>
chip_gen: v5e
topology: v5e:2x2
jax: 0.10.0
libtpu: 0.0.40
codegen_flags: <defaults>
</compile_context>

<pallas_src>
import jax
import jax.numpy as jnp
from jax.experimental import pallas as pl
from jax.experimental.pallas import tpu as pltpu

LANE = 128        # padded lane width for hidden activations / weight out-dims
ROW_ALIGN = 16    # batch-row alignment (covers f32 (8,.) and bf16 (16,.) tiling)
MAX_TILE_N = 2048 # batch rows per grid step (sweepable; >=512 is ~HBM roofline)


def _round_up(n, m):
    return ((n + m - 1) // m) * m


def _mlp_kernel(x_ref, w1_ref, b1_ref, w2_ref, b2_ref, w3_ref, b3_ref, o_ref):
    """One batch tile: (TILE_N, inputf) -> (TILE_N, 1).

    Weights are (in, out), zero-padded to 128 lanes.  Padded columns stay
    exactly zero through bias-add + ReLU, so the math matches the unpadded
    network.  MXU inputs may be bf16; accumulation / elementwise is f32.
    """
    cdt = w1_ref.dtype  # MXU input dtype (f32 or bf16)

    # Layer 1: Linear(inputf, 10) + ReLU   (K = true inputf; x is not lane-padded)
    h1 = jnp.dot(x_ref[...], w1_ref[...], preferred_element_type=jnp.float32)
    h1 = jnp.maximum(h1 + b1_ref[...], 0.0)

    # Layer 2: Linear(10, 8) + ReLU
    h2 = jnp.dot(h1.astype(cdt), w2_ref[...], preferred_element_type=jnp.float32)
    h2 = jnp.maximum(h2 + b2_ref[...], 0.0)

    # Layer 3: Linear(8, 1) + Sigmoid -- only lane 0 is meaningful; store (TILE_N, 1).
    z3 = jnp.dot(h2.astype(cdt), w3_ref[...], preferred_element_type=jnp.float32)
    z = (z3 + b3_ref[...])[:, 0:1]
    o_ref[...] = (1.0 / (1.0 + jnp.exp(-z))).astype(o_ref.dtype)


def _pad_to(a, shape):
    return jnp.pad(a, tuple((0, t - s) for s, t in zip(a.shape, shape)))


def prepare_params(params, *, compute_dtype=jnp.float32):
    """Transpose PyTorch (out,in) weights to (in,out) and zero-pad the out/K
    dims to 128 lanes.  Call ONCE; reuse the result for every forward pass."""
    inputf = params["w1"].shape[1]
    return {
        "w1": _pad_to(params["w1"].T, (inputf, LANE)).astype(compute_dtype),  # (inputf,128)
        "w2": _pad_to(params["w2"].T, (LANE, LANE)).astype(compute_dtype),    # (128,128)
        "w3": _pad_to(params["w3"].T, (LANE, LANE)).astype(compute_dtype),    # (128,128)
        "b1": _pad_to(params["b1"][None, :], (1, LANE)).astype(jnp.float32),
        "b2": _pad_to(params["b2"][None, :], (1, LANE)).astype(jnp.float32),
        "b3": _pad_to(params["b3"][None, :], (1, LANE)).astype(jnp.float32),
    }


@jax.jit
def mlp_forward(x, prepped):
    """x: (N, inputf) float32.  prepped: output of prepare_params()."""
    n, inputf = x.shape
    cdt = prepped["w1"].dtype
    # In a real pipeline x would already arrive in `cdt` (bf16 on v6e/v7x);
    # the cast here is just for the self-contained demo.
    x = x.astype(cdt)

    tile_n = min(MAX_TILE_N, _round_up(n, ROW_ALIGN))
    grid_n = pl.cdiv(n, tile_n)
    n_pad = grid_n * tile_n
    if n_pad != n:
        x = jnp.pad(x, ((0, n_pad - n), (0, 0)))  # row padding only

    const = lambda shape: pl.BlockSpec(shape, lambda i: (0, 0))  # resident blocks

    out = pl.pallas_call(
        _mlp_kernel,
        out_shape=jax.ShapeDtypeStruct((n_pad, 1), jnp.float32),
        grid=(grid_n,),
        in_specs=[
            pl.BlockSpec((tile_n, inputf), lambda i: (i, 0)),  # x: batch-tiled
            const((inputf, LANE)), const((1, LANE)),           # w1, b1
            const((LANE, LANE)),   const((1, LANE)),           # w2, b2
            const((LANE, LANE)),   const((1, LANE)),           # w3, b3
        ],
        out_specs=pl.BlockSpec((tile_n, 1), lambda i: (i, 0)),
        compiler_params=pltpu.CompilerParams(
            dimension_semantics=("parallel",)),  # shard batch across v7x's 2 TCs
    )(x, prepped["w1"], prepped["b1"], prepped["w2"], prepped["b2"],
      prepped["w3"], prepped["b3"])

    return out[:n]  # (N, 1), matching PyTorch output shape


def init_params(key, inputf):
    """Deterministic init mimicking the PyTorch module's __init__."""
    k = jax.random.split(key, 6)

    def kaiming_uniform(key, out_f, in_f):
        bound = jnp.sqrt(2.0) * jnp.sqrt(3.0 / in_f)
        return jax.random.uniform(key, (out_f, in_f), jnp.float32, -bound, bound)

    def xavier_uniform(key, out_f, in_f):
        bound = jnp.sqrt(6.0 / (in_f + out_f))
        return jax.random.uniform(key, (out_f, in_f), jnp.float32, -bound, bound)

    def bias_init(key, out_f, in_f):
        bound = 1.0 / jnp.sqrt(in_f)
        return jax.random.uniform(key, (out_f,), jnp.float32, -bound, bound)

    return {
        "w1": kaiming_uniform(k[0], 10, inputf),
        "b1": bias_init(k[1], 10, inputf),
        "w2": kaiming_uniform(k[2], 8, 10),
        "b2": bias_init(k[3], 8, 10),
        "w3": xavier_uniform(k[4], 1, 8),
        "b3": bias_init(k[5], 1, 8),
    }


def _reference_forward(x, p):
    h1 = jnp.maximum(x @ p["w1"].T + p["b1"], 0.0)
    h2 = jnp.maximum(h1 @ p["w2"].T + p["b2"], 0.0)
    z3 = h2 @ p["w3"].T + p["b3"]
    return 1.0 / (1.0 + jnp.exp(-z3))


if __name__ == "__main__":
    inputf = 16
    batch = 8
    key = jax.random.PRNGKey(0)
    kx, kp = jax.random.split(key)

    x = jax.random.normal(kx, (batch, inputf), jnp.float32)
    params = init_params(kp, inputf)

    # f32 path: exact match against the reference.
    pre32 = prepare_params(params, compute_dtype=jnp.float32)
    y = jax.block_until_ready(mlp_forward(x, pre32))
    y_ref = _reference_forward(x, params)
    assert y.shape == (batch, 1), y.shape
    assert jnp.allclose(y, y_ref, atol=1e-5, rtol=1e-5), (y, y_ref)

    # bf16 MXU-input path (HBM-read compression lever for v6e/v7x), f32 accumulate.
    prebf = prepare_params(params, compute_dtype=jnp.bfloat16)
    y_bf = jax.block_until_ready(mlp_forward(x, prebf))
    assert y_bf.shape == (batch, 1), y_bf.shape
    assert jnp.allclose(y_bf, y_ref, atol=2e-2), (y_bf, y_ref)

    # Larger batch to exercise the multi-tile batch grid + row padding path.
    xl = jax.random.normal(kx, (3000, inputf), jnp.float32)
    yl = jax.block_until_ready(mlp_forward(xl, pre32))
    yl_ref = _reference_forward(xl, params)
    assert yl.shape == (3000, 1), yl.shape
    assert jnp.allclose(yl, yl_ref, atol=1e-5, rtol=1e-5)

    print("KERNEL_OK")
</pallas_src>

<mosaic_0001>
module attributes {stable_mosaic.version = 11 : i64} {
  func.func @_mlp_kernel(%arg0: i32, %arg1: memref<16x16xf32, #tpu.memory_space<vmem>>, %arg2: memref<16x128xf32, #tpu.memory_space<vmem>>, %arg3: memref<1x128xf32, #tpu.memory_space<vmem>>, %arg4: memref<128x128xf32, #tpu.memory_space<vmem>>, %arg5: memref<1x128xf32, #tpu.memory_space<vmem>>, %arg6: memref<128x128xf32, #tpu.memory_space<vmem>>, %arg7: memref<1x128xf32, #tpu.memory_space<vmem>>, %arg8: memref<16x1xf32, #tpu.memory_space<vmem>>) attributes {dimension_semantics = [#tpu.dimension_semantics<parallel>], iteration_bounds = array<i64: 1>, scalar_prefetch = 0 : i64, scratch_operands = 0 : i64, tpu.core_type = #tpu.core_type<tc>, window_params = [{transform_indices = @transform_0, window_bounds = array<i64: 16, 16>}, {pipeline_mode = #tpu.pipeline_mode<synchronous>, transform_indices = @transform_1, window_bounds = array<i64: 16, 128>}, {pipeline_mode = #tpu.pipeline_mode<synchronous>, transform_indices = @transform_2, window_bounds = array<i64: 1, 128>}, {pipeline_mode = #tpu.pipeline_mode<synchronous>, transform_indices = @transform_3, window_bounds = array<i64: 128, 128>}, {pipeline_mode = #tpu.pipeline_mode<synchronous>, transform_indices = @transform_4, window_bounds = array<i64: 1, 128>}, {pipeline_mode = #tpu.pipeline_mode<synchronous>, transform_indices = @transform_5, window_bounds = array<i64: 128, 128>}, {pipeline_mode = #tpu.pipeline_mode<synchronous>, transform_indices = @transform_6, window_bounds = array<i64: 1, 128>}, {transform_indices = @transform_7, window_bounds = array<i64: 16, 1>}]} {
    %c0 = arith.constant 0 : index
    %c0_0 = arith.constant 0 : index
    %0 = vector.load %arg1[%c0, %c0_0] : memref<16x16xf32, #tpu.memory_space<vmem>>, vector<16x16xf32>
    %c0_1 = arith.constant 0 : index
    %c0_2 = arith.constant 0 : index
    %1 = vector.load %arg2[%c0_1, %c0_2] : memref<16x128xf32, #tpu.memory_space<vmem>>, vector<16x128xf32>
    %cst = arith.constant dense<0.000000e+00> : vector<16x128xf32>
    %2 = tpu.matmul %0, %1, %cst {dimension_numbers = #tpu.dot_dimension_numbers<[1], [0], [0], [1], [0, 0, 1, 1], [], []>} : vector<16x16xf32>, vector<16x128xf32>, vector<16x128xf32> -> vector<16x128xf32>
    %c0_3 = arith.constant 0 : index
    %c0_4 = arith.constant 0 : index
    %3 = vector.load %arg3[%c0_3, %c0_4] : memref<1x128xf32, #tpu.memory_space<vmem>>, vector<1x128xf32>
    %4 = vector.broadcast %3 : vector<1x128xf32> to vector<16x128xf32>
    %5 = arith.addf %2, %4 : vector<16x128xf32>
    %cst_5 = arith.constant 0.000000e+00 : f32
    %6 = vector.broadcast %cst_5 : f32 to vector<16x128xf32>
    %7 = arith.maximumf %5, %6 : vector<16x128xf32>
    %c0_6 = arith.constant 0 : index
    %c0_7 = arith.constant 0 : index
    %8 = vector.load %arg4[%c0_6, %c0_7] : memref<128x128xf32, #tpu.memory_space<vmem>>, vector<128x128xf32>
    %cst_8 = arith.constant dense<0.000000e+00> : vector<16x128xf32>
    %9 = tpu.matmul %7, %8, %cst_8 {dimension_numbers = #tpu.dot_dimension_numbers<[1], [0], [0], [1], [0, 0, 1, 1], [], []>} : vector<16x128xf32>, vector<128x128xf32>, vector<16x128xf32> -> vector<16x128xf32>
    %c0_9 = arith.constant 0 : index
    %c0_10 = arith.constant 0 : index
    %10 = vector.load %arg5[%c0_9, %c0_10] : memref<1x128xf32, #tpu.memory_space<vmem>>, vector<1x128xf32>
    %11 = vector.broadcast %10 : vector<1x128xf32> to vector<16x128xf32>
    %12 = arith.addf %9, %11 : vector<16x128xf32>
    %cst_11 = arith.constant 0.000000e+00 : f32
    %13 = vector.broadcast %cst_11 : f32 to vector<16x128xf32>
    %14 = arith.maximumf %12, %13 : vector<16x128xf32>
    %c0_12 = arith.constant 0 : index
    %c0_13 = arith.constant 0 : index
    %15 = vector.load %arg6[%c0_12, %c0_13] : memref<128x128xf32, #tpu.memory_space<vmem>>, vector<128x128xf32>
    %cst_14 = arith.constant dense<0.000000e+00> : vector<16x128xf32>
    %16 = tpu.matmul %14, %15, %cst_14 {dimension_numbers = #tpu.dot_dimension_numbers<[1], [0], [0], [1], [0, 0, 1, 1], [], []>} : vector<16x128xf32>, vector<128x128xf32>, vector<16x128xf32> -> vector<16x128xf32>
    %c0_15 = arith.constant 0 : index
    %c0_16 = arith.constant 0 : index
    %17 = vector.load %arg7[%c0_15, %c0_16] : memref<1x128xf32, #tpu.memory_space<vmem>>, vector<1x128xf32>
    %18 = vector.broadcast %17 : vector<1x128xf32> to vector<16x128xf32>
    %19 = arith.addf %16, %18 : vector<16x128xf32>
    %20 = vector.extract_strided_slice %19 {offsets = [0, 0], sizes = [16, 1], strides = [1, 1]} : vector<16x128xf32> to vector<16x1xf32>
    %cst_17 = arith.constant 0.000000e+00 : f32
    %21 = vector.broadcast %cst_17 : f32 to vector<16x1xf32>
    %22 = arith.subf %21, %20 : vector<16x1xf32>
    %23 = math.exp %22 : vector<16x1xf32>
    %cst_18 = arith.constant 1.000000e+00 : f32
    %24 = vector.broadcast %cst_18 : f32 to vector<16x1xf32>
    %25 = arith.addf %24, %23 : vector<16x1xf32>
    %cst_19 = arith.constant 1.000000e+00 : f32
    %26 = vector.broadcast %cst_19 : f32 to vector<16x1xf32>
    %27 = arith.divf %26, %25 : vector<16x1xf32>
    %c0_20 = arith.constant 0 : index
    %c0_21 = arith.constant 0 : index
    %28 = vector.load %arg8[%c0_20, %c0_21] : memref<16x1xf32, #tpu.memory_space<vmem>>, vector<16x1xf32>
    tpu.vector_store %arg8[%c0_20, %c0_21], %27 {strides = array<i32>} : memref<16x1xf32, #tpu.memory_space<vmem>>, vector<16x1xf32>,
    return
  }
  func.func @transform_0(%arg0: i32) -> (i32, i32) {
    %c0_i32 = arith.constant 0 : i32
    %c0_i32_0 = arith.constant 0 : i32
    return %arg0, %c0_i32 : i32, i32
  }
  func.func @transform_1(%arg0: i32) -> (i32, i32) {
    %c0_i32 = arith.constant 0 : i32
    %c0_i32_0 = arith.constant 0 : i32
    %c0_i32_1 = arith.constant 0 : i32
    return %c0_i32, %c0_i32_0 : i32, i32
  }
  func.func @transform_2(%arg0: i32) -> (i32, i32) {
    %c0_i32 = arith.constant 0 : i32
    %c0_i32_0 = arith.constant 0 : i32
    %c0_i32_1 = arith.constant 0 : i32
    return %c0_i32, %c0_i32_0 : i32, i32
  }
  func.func @transform_3(%arg0: i32) -> (i32, i32) {
    %c0_i32 = arith.constant 0 : i32
    %c0_i32_0 = arith.constant 0 : i32
    %c0_i32_1 = arith.constant 0 : i32
    return %c0_i32, %c0_i32_0 : i32, i32
  }
  func.func @transform_4(%arg0: i32) -> (i32, i32) {
    %c0_i32 = arith.constant 0 : i32
    %c0_i32_0 = arith.constant 0 : i32
    %c0_i32_1 = arith.constant 0 : i32
    return %c0_i32, %c0_i32_0 : i32, i32
  }
  func.func @transform_5(%arg0: i32) -> (i32, i32) {
    %c0_i32 = arith.constant 0 : i32
    %c0_i32_0 = arith.constant 0 : i32
    %c0_i32_1 = arith.constant 0 : i32
    return %c0_i32, %c0_i32_0 : i32, i32
  }
  func.func @transform_6(%arg0: i32) -> (i32, i32) {
    %c0_i32 = arith.constant 0 : i32
    %c0_i32_0 = arith.constant 0 : i32
    %c0_i32_1 = arith.constant 0 : i32
    return %c0_i32, %c0_i32_0 : i32, i32
  }
  func.func @transform_7(%arg0: i32) -> (i32, i32) {
    %c0_i32 = arith.constant 0 : i32
    %c0_i32_0 = arith.constant 0 : i32
    return %arg0, %c0_i32 : i32, i32
  }
}

</mosaic_0001>

<bundles_post_ra>
// kernel: mlp_forward.1
= control target key start
LH: loop header
LB: loop body
LE: loop exit
PB: predicated region body
PF: predicated region fallthrough
CT: control target
= control target key end

     0   :  { %12 = vsyncpa [#allocation3], 0  ;;  %s415_s0 = inlined_call_operand.vmem [shape: f32[16,16], index: 0, kind: input, shape index: {}]   ;;  %s416_s1 = inlined_call_operand.vmem [shape: f32[16,128], index: 1, kind: input, shape index: {}]   ;;  %s417_s2 = inlined_call_operand.vmem [shape: f32[1,128], index: 2, kind: input, shape index: {}]   ;;  %s418_s3 = inlined_call_operand.hbm [shape: f32[128,128], index: 3, kind: input, shape index: {}]   ;;  %s419_s4 = inlined_call_operand.vmem [shape: f32[1,128], index: 4, kind: input, shape index: {}]   ;;  %s420_s5 = inlined_call_operand.hbm [shape: f32[128,128], index: 5, kind: input, shape index: {}]   ;;  %s421_s6 = inlined_call_operand.vmem [shape: f32[1,128], index: 6, kind: input, shape index: {}]   ;;  %s422_s7 = inlined_call_operand.vmem [shape: f32[16,1], index: 7, kind: output, shape index: {}]  }
   0x1   :  { %s24_s26 = sshll.u32 %s418_s3, 4  ;;  %s25_s26 = int_to_ptr.hbm [resolvable:$true] %s24_s26 }
   0x2   :  { %13 = vsyncpa [#allocation5], 0  ;;  %s334_s27 = smov [#allocation2]   ;;  %s39_s8 = sshll.u32 %s420_s5, 4  ;;  %s40_s8 = int_to_ptr.hbm [resolvable:$true] %s39_s8 }
   0x3   :  { %s26_s28 = sshll.u32 %s334_s27, 4  ;;  %s335_s9 = smov 128   ;;  %s27_s28 = int_to_ptr.vmem [resolvable:$true] %s26_s28 }
   0x4   :  { %s336_s10 = smov 8   ;;  %s337_s11 = smov [#allocation4]  }
   0x5   :  { %32 = dma.hbm_to_vmem [thread:$0]  %s25_s26, 2048, %s27_s28, [#allocation3], %s335_s9, %s335_s9, %s336_s10  }
   0x6   :  { %s41_s12 = sshll.u32 %s337_s11, 4  ;;  %s42_s12 = int_to_ptr.vmem [resolvable:$true] %s41_s12 }
   0x7   :  { %47 = dma.hbm_to_vmem [thread:$0]  %s40_s8, 2048, %s42_s12, [#allocation5], %s335_s9, %s335_s9, %s336_s10  }
   0x8   :  { %330 = dma.done.wait [#allocation3], 2048  }
   0x9   :  { %331 = vsyncadd [#allocation3], 4294965248 }
   0xa   :  { %332 = dma.done.wait [#allocation5], 2048  }
   0xb   :  { %333 = vsyncadd [#allocation5], 4294965248  ;;  %v61_v0 = vld [vmem:[%s416_s1 + $0x8] sm:$0xff]  ;;  %v60_v1 = vld [vmem:[%s416_s1] sm:$0xff]  ;;  %vm66_vm0 = vcmask 130048   ;;  %vm224_vm4 = vcmask 7168  }
   0xc   :  { %87 = vmatpush.msra.mxu0 %v61_v0  ;;  %v58_v2 = vld [vmem:[%s415_s0] sm:$0xff]  ;;  %v113_v3 = vld [vmem:[#allocation2 + $0x78] sm:$0xff]  ;;  %v112_v4 = vld [vmem:[#allocation2 + $0x70] sm:$0xff] }
   0xd   :  { %118 = vmatpush.msra.mxu1 %v113_v3  ;;  %235 = vmatpush.msra.mxu3 %v113_v3  ;;  %v111_v5 = vld [vmem:[#allocation2 + $0x68] sm:$0xff]  ;;  %v110_v6 = vld [vmem:[#allocation2 + $0x60] sm:$0xff]  ;;  %v109_v7 = vld [vmem:[#allocation2 + $0x58] sm:$0xff] }
   0xe   :  { %88 = vmatpush.msra.mxu0 %v60_v1  ;;  %v59_v8 = vld [vmem:[%s415_s0 + $0x8] sm:$0xff]  ;;  %v108_v9 = vld [vmem:[#allocation2 + $0x50] sm:$0xff]  ;;  %v106_v11 = vld [vmem:[#allocation2 + $0x40] sm:$0xff] }
   0xf   :  { %233 = vmatmul.msk.f32.vlgmr.msra.gmra.mxu0 %vm66_vm0, %v58_v2  ;;  %119 = vmatpush.msra.mxu1 %v112_v4  ;;  %v107_v10 = vld [vmem:[#allocation2 + $0x48] sm:$0xff]  ;;  %v105_v12 = vld [vmem:[#allocation2 + $0x38] sm:$0xff]  ;;  %v104_v13 = vld [vmem:[#allocation2 + $0x30] sm:$0xff] }
  0x10   :  { %236 = vmatpush.msra.mxu3 %v112_v4  ;;  %v103_v14 = vld [vmem:[#allocation2 + $0x28] sm:$0xff]  ;;  %v102_v15 = vld [vmem:[#allocation2 + $0x20] sm:$0xff]  ;;  %v101_v16 = vld [vmem:[#allocation2 + $0x18] sm:$0xff] }
  0x11   :  { %120 = vmatpush.msra.mxu1 %v111_v5  ;;  %v100_v17 = vld [vmem:[#allocation2 + $0x10] sm:$0xff]  ;;  %v99_v18 = vld [vmem:[#allocation2 + $0x8] sm:$0xff]  ;;  %v98_v19 = vld [vmem:[#allocation2] sm:$0xff] }
  0x12   :  { %237 = vmatpush.msra.mxu3 %v111_v5  ;;  %v158_v20 = vld [vmem:[#allocation4 + $0x78] sm:$0xff]  ;;  %v157_v21 = vld [vmem:[#allocation4 + $0x70] sm:$0xff]  ;;  %v156_v22 = vld [vmem:[#allocation4 + $0x68] sm:$0xff] }
  0x13   :  { %121 = vmatpush.msra.mxu1 %v110_v6  ;;  %163 = vmatpush.msrb.mxu0 %v158_v20  ;;  %v155_v23 = vld [vmem:[#allocation4 + $0x60] sm:$0xff]  ;;  %v154_v24 = vld [vmem:[#allocation4 + $0x58] sm:$0xff]  ;;  %v153_v25 = vld [vmem:[#allocation4 + $0x50] sm:$0xff] }
  0x14   :  { %238 = vmatpush.msra.mxu3 %v110_v6  ;;  %251 = vmatpush.msra.mxu2 %v158_v20  ;;  %v152_v26 = vld [vmem:[#allocation4 + $0x48] sm:$0xff]  ;;  %v151_v27 = vld [vmem:[#allocation4 + $0x40] sm:$0xff]  ;;  %v150_v28 = vld [vmem:[#allocation4 + $0x38] sm:$0xff] }
  0x15   :  { %122 = vmatpush.msra.mxu1 %v109_v7  ;;  %164 = vmatpush.msrb.mxu0 %v157_v21  ;;  %v271_v29 = vld [vmem:[%s417_s2] ss:$0 sm:$0xff]  ;;  %v149_v30 = vld [vmem:[#allocation4 + $0x30] sm:$0xff]  ;;  %v148_v31 = vld [vmem:[#allocation4 + $0x28] sm:$0xff] }
  0x16   :  { %239 = vmatpush.msra.mxu3 %v109_v7  ;;  %252 = vmatpush.msra.mxu2 %v157_v21  ;;  %v147_v34 = vld [vmem:[#allocation4 + $0x20] sm:$0xff]  ;;  %v146_v36 = vld [vmem:[#allocation4 + $0x18] sm:$0xff]  ;;  %v145_v40 = vld [vmem:[#allocation4 + $0x10] sm:$0xff] }
  0x17   :  { %234 = vmatmul.msk.f32.gmra.mxu0 %vm66_vm0, %v59_v8  ;;  %123 = vmatpush.msra.mxu1 %v108_v9  ;;  %v144_v41 = vld [vmem:[#allocation4 + $0x8] sm:$0xff]  ;;  %v143_v42 = vld [vmem:[#allocation4] sm:$0xff] }
  0x18   :  { %240 = vmatpush.msra.mxu3 %v108_v9  ;;  %165 = vmatpush.msrb.mxu0 %v156_v22  ;;  %v272_v43 = vld [vmem:[%s419_s4] ss:$0 sm:$0xff] }
  0x19   :  { %124 = vmatpush.msra.mxu1 %v107_v10  ;;  %253 = vmatpush.msra.mxu2 %v156_v22  ;;  %v273_v50 = vld [vmem:[%s421_s6] ss:$0 sm:$0xff] }
  0x1a   :  { %241 = vmatpush.msra.mxu3 %v107_v10  ;;  %166 = vmatpush.msrb.mxu0 %v155_v23 }
  0x1b   :  { %125 = vmatpush.msra.mxu1 %v106_v11  ;;  %254 = vmatpush.msra.mxu2 %v155_v23 }
  0x1c   :  { %242 = vmatpush.msra.mxu3 %v106_v11  ;;  %167 = vmatpush.msrb.mxu0 %v154_v24 }
  0x1d   :  { %126 = vmatpush.msra.mxu1 %v105_v12  ;;  %255 = vmatpush.msra.mxu2 %v154_v24 }
  0x1e   :  { %243 = vmatpush.msra.mxu3 %v105_v12  ;;  %168 = vmatpush.msrb.mxu0 %v153_v25 }
  0x1f   :  { %127 = vmatpush.msra.mxu1 %v104_v13  ;;  %256 = vmatpush.msra.mxu2 %v153_v25 }
  0x20   :  { %244 = vmatpush.msra.mxu3 %v104_v13  ;;  %169 = vmatpush.msrb.mxu0 %v152_v26 }
  0x21   :  { %128 = vmatpush.msra.mxu1 %v103_v14  ;;  %257 = vmatpush.msra.mxu2 %v152_v26 }
  0x22   :  { %245 = vmatpush.msra.mxu3 %v103_v14  ;;  %170 = vmatpush.msrb.mxu0 %v151_v27 }
  0x23   :  { %129 = vmatpush.msra.mxu1 %v102_v15  ;;  %258 = vmatpush.msra.mxu2 %v151_v27 }
  0x24   :  { %246 = vmatpush.msra.mxu3 %v102_v15  ;;  %171 = vmatpush.msrb.mxu0 %v150_v28 }
  0x25   :  { %130 = vmatpush.msra.mxu1 %v101_v16  ;;  %259 = vmatpush.msra.mxu2 %v150_v28 }
  0x26   :  { %247 = vmatpush.msra.mxu3 %v101_v16  ;;  %172 = vmatpush.msrb.mxu0 %v149_v30 }
  0x27   :  { %131 = vmatpush.msra.mxu1 %v100_v17  ;;  %260 = vmatpush.msra.mxu2 %v149_v30 }
  0x28   :  { %248 = vmatpush.msra.mxu3 %v100_v17  ;;  %173 = vmatpush.msrb.mxu0 %v148_v31 }
  0x29   :  { %132 = vmatpush.msra.mxu1 %v99_v18  ;;  %261 = vmatpush.msra.mxu2 %v148_v31 }
  0x2a   :  { %249 = vmatpush.msra.mxu3 %v99_v18  ;;  %174 = vmatpush.msrb.mxu0 %v147_v34 }
  0x2b   :  { %133 = vmatpush.msra.mxu1 %v98_v19  ;;  %262 = vmatpush.msra.mxu2 %v147_v34 }
  0x2c   :  { %250 = vmatpush.msra.mxu3 %v98_v19  ;;  %175 = vmatpush.msrb.mxu0 %v146_v36 }
  0x2d   :  { %263 = vmatpush.msra.mxu2 %v146_v36 }
  0x2e   :  { %176 = vmatpush.msrb.mxu0 %v145_v40 }
  0x2f   :  { %264 = vmatpush.msra.mxu2 %v145_v40 }
  0x30   :  { %177 = vmatpush.msrb.mxu0 %v144_v41 }
  0x31   :  { %265 = vmatpush.msra.mxu2 %v144_v41 }
  0x32   :  { %178 = vmatpush.msrb.mxu0 %v143_v42 }
  0x33   :  { %266 = vmatpush.msra.mxu2 %v143_v42 }
  0x8c   :  { %v90_v32 = vpop.f32.mrf.mxu0 }
  0x8d   :  { %v91_v33 = vadd.f32 %v271_v29, %v90_v32 }
  0x8f   :  { %v96_v35 = vmax.f32 %v91_v33, 0.0 }
  0x91   :  { %134 = vmatmul.f32.vlgmr.msra.gmra.mxu1 %v96_v35 }
  0x94   :  { %v93_v37 = vpop.f32.mrf.mxu0 }
  0x95   :  { %v94_v38 = vadd.f32 %v271_v29, %v93_v37 }
  0x97   :  { %v97_v39 = vmax.f32 %v94_v38, 0.0 }
  0x99   :  { %137 = vmatmul.f32.vlgmr.msra.gmra.mxu3 %v97_v39 }
 0x10e   :  { %v135_v44 = vpop.f32.mrf.mxu1 }
 0x10f   :  { %v136_v45 = vadd.f32 %v272_v43, %v135_v44 }
 0x111   :  { %v141_v46 = vmax.f32 %v136_v45, 0.0 }
 0x113   :  { %179 = vmatmul.f32.vlgmr.msrb.gmra.mxu0 %v141_v46 }
 0x11c   :  { %v138_v47 = vpop.f32.mrf.mxu3 }
 0x11d   :  { %v139_v48 = vadd.f32 %v272_v43, %v138_v47 }
 0x11f   :  { %v142_v49 = vmax.f32 %v139_v48, 0.0 }
 0x121   :  { %182 = vmatmul.f32.vlgmr.msra.gmra.mxu2 %v142_v49 }
 0x190   :  { %v180_v51 = vpop.f32.mrf.mxu0 }
 0x191   :  { %v181_v52 = vadd.f32 %v273_v50, %v180_v51 }
 0x193   :  { %v186_v53 = vsub.f32 0.0, %v181_v52 }
 0x195   :  { %v188_v54 = vmul.f32 1.442695, %v186_v53 }
 0x197   :  { %274 = vpow2.f32 %v188_v54 }
 0x19d   :  { %v275_v55 = vpop.eup %274 }
 0x19e   :  { %v192_v56 = vadd.f32 1.0, %v275_v55 }
 0x1a0   :  { %276 = vrcp.f32 %v192_v56  ;;  %v205_v0 = vand.u32 2147483648, %v192_v56  ;;  %v203_v2 = vand.u32 2147483647, %v192_v56  ;;  %vm199_vm2 = vweird.f32 %v192_v56 }
 0x1a2   :  { %v206_v4 = vor.u32 1.1754944e-38, %v205_v0  ;;  %vm204_vm5 = vcmp.eq.f32.partialorder %v203_v2, 8.507059e+37 }
 0x1a4   :  { %v183_v57 = vpop.f32.mrf.mxu2 }
 0x1a5   :  { %v184_v58 = vadd.f32 %v273_v50, %v183_v57 }
 0x1a6   :  { %v277_v59 = vpop.eup %276 }
 0x1a7   :  { %v195_v60 = vmul.f32 %v277_v59, %v192_v56  ;;  %v187_v61 = vsub.f32 0.0, %v184_v58  ;;  %vm200_vm1 = vweird.f32 %v277_v59 }
 0x1a8   :  { %vm201_vm3 = vmor %vm199_vm2, %vm200_vm1 }
 0x1a9   :  { %v196_v62 = vsub.f32 1.0, %v195_v60  ;;  %v190_v63 = vmul.f32 1.442695, %v187_v61 }
 0x1ab   :  { %v197_v1 = vmul.f32 %v277_v59, %v196_v62  ;;  %278 = vpow2.f32 %v190_v63 }
 0x1ad   :  { %v198_v3 = vadd.f32 %v277_v59, %v197_v1 }
 0x1af   :  { %v202_v5 = vsel %vm201_vm3, %v277_v59, %v198_v3 }
 0x1b0   :  { %v207_v6 = vsel %vm204_vm5, %v206_v4, %v202_v5 }
 0x1b1   :  { %v279_v7 = vpop.eup %278  ;;  %225 = vst.msk [vmem:[%s422_s7] sm:$0xff] %vm224_vm4, %v207_v6 }
 0x1b2   :  { %v193_v8 = vadd.f32 1.0, %v279_v7 }
 0x1b4   :  { %280 = vrcp.f32 %v193_v8  ;;  %v220_v12 = vand.u32 2147483648, %v193_v8  ;;  %v218_v14 = vand.u32 2147483647, %v193_v8  ;;  %vm214_vm7 = vweird.f32 %v193_v8 }
 0x1b6   :  { %v221_v16 = vor.u32 1.1754944e-38, %v220_v12  ;;  %vm219_vm9 = vcmp.eq.f32.partialorder %v218_v14, 8.507059e+37 }
 0x1ba   :  { %v281_v9 = vpop.eup %280 }
 0x1bb   :  { %v210_v10 = vmul.f32 %v281_v9, %v193_v8  ;;  %vm215_vm6 = vweird.f32 %v281_v9 }
 0x1bc   :  { %vm216_vm8 = vmor %vm214_vm7, %vm215_vm6 }
 0x1bd   :  { %v211_v11 = vsub.f32 1.0, %v210_v10 }
 0x1bf   :  { %v212_v13 = vmul.f32 %v281_v9, %v211_v11 }
 0x1c1   :  { %v213_v15 = vadd.f32 %v281_v9, %v212_v13 }
 0x1c3   :  { %v217_v17 = vsel %vm216_vm8, %v281_v9, %v213_v15 }
 0x1c4   :  { %v222_v18 = vsel %vm219_vm9, %v221_v16, %v217_v17 }
 0x1c5   :  { %226 = vst.msk [vmem:[%s422_s7 + $0x8] sm:$0xff] %vm224_vm4, %v222_v18 }
 0x1c6   :  { %231 = vsyncpa [#allocation3], 1 }
 0x1c7   :  { %232 = vsyncpa [#allocation5], 1 }

</bundles_post_ra>
